<compile_context>
chip_gen: v5e
topology: v5e:2x2
jax: 0.10.0
libtpu: 0.0.40
codegen_flags: <defaults>
</compile_context>

<pallas_src>
import jax
import jax.numpy as jnp
from jax.experimental import pallas as pl
from jax.experimental.pallas import tpu as pltpu


def _round_up(x, m):
    return ((x + m - 1) // m) * m


def _fused_head_kernel(x_ref, ws_ref, bs_ref, wa_ref, ba_ref,
                       state_ref, action_ref):
    """One row tile of both linear heads.

    x_ref      : (TM, 2c) f32  activation rows  [state_token | action_token]
    ws_ref     : (2c, c)  bf16 state-head weight, pre-transposed (in, out)
    bs_ref     : (1, c)   f32  state-head bias
    wa_ref     : (c, NA)  bf16 action-head weight, pre-transposed, N lane-padded
    ba_ref     : (1, NA)  f32  action-head bias, lane-padded
    state_ref  : (TM, c)
    action_ref : (TM, NA)
    """
    c = ws_ref.shape[1]
    # Single activation load, cast once to bf16 for native-MXU matmuls.
    x = x_ref[...].astype(ws_ref.dtype)                                # (TM, 2c)

    # state_preds = [state|action] @ Ws^T + bs   (f32 accumulate)
    st = jnp.dot(x, ws_ref[...], preferred_element_type=jnp.float32)
    state_ref[...] = (st + bs_ref[...]).astype(state_ref.dtype)

    # action_preds = state_half @ Wa^T + ba ; offset-0 lane slice, K = c only.
    ac = jnp.dot(x[:, :c], wa_ref[...], preferred_element_type=jnp.float32)
    action_ref[...] = (ac + ba_ref[...]).astype(action_ref.dtype)


def fused_pact_head(sa_flat, ws_t, b_state, wa_t, ba_pad, *, tile_m=512):
    """sa_flat: (M, 2c) -> (state (M, c), action (M, NA_pad))."""
    M, K = sa_flat.shape
    Kw, c = ws_t.shape
    cw, NA = wa_t.shape
    assert K == Kw == 2 * c and cw == c

    # Row tile: multiple of 8 sublanes, at most tile_m, and small enough that
    # the grid has ~4+ steps so DMAs pipeline and both v7x TCs get work.
    tm = max(8, (int(tile_m) // 8) * 8)
    tm = min(tm, _round_up(pl.cdiv(M, 4), 8))
    tm = max(8, min(tm, _round_up(M, 8)))

    act_bytes = jnp.dtype(sa_flat.dtype).itemsize
    w_bytes = jnp.dtype(ws_t.dtype).itemsize

    def vmem_need(tm_):
        # Activation/output tiles are double-buffered; constant-index weight /
        # bias blocks are ALSO double-buffered by the default pipeline, so
        # count them twice as well (fixes the previous under-budget).
        tiles = 2 * tm_ * (K + c + NA) * act_bytes
        weights = 2 * ((K * c + c * NA) * w_bytes + (c + NA) * 4)
        return tiles + weights + (2 << 20)

    try:
        cap = int(0.8 * pltpu.get_tpu_info().vmem_capacity_bytes)
    except Exception:
        cap = int(0.8 * (64 << 20))   # conservative (v7x-sized) fallback

    while tm > 8 and vmem_need(tm) > cap:
        tm = max(8, ((tm // 2) // 8) * 8)
    vmem_limit = int(min(max(vmem_need(tm), 32 << 20), cap))

    grid = (pl.cdiv(M, tm),)
    # A ragged last row block relies on standard Pallas partial-block handling;
    # rows are independent, so padding rows never affect in-bounds results.

    return pl.pallas_call(
        _fused_head_kernel,
        out_shape=(
            jax.ShapeDtypeStruct((M, c), sa_flat.dtype),
            jax.ShapeDtypeStruct((M, NA), sa_flat.dtype),
        ),
        grid=grid,
        in_specs=[
            pl.BlockSpec((tm, K), lambda i: (i, 0)),   # activation row tile
            pl.BlockSpec((K, c), lambda i: (0, 0)),    # resident Ws^T (bf16)
            pl.BlockSpec((1, c), lambda i: (0, 0)),    # resident state bias
            pl.BlockSpec((c, NA), lambda i: (0, 0)),   # resident Wa^T (bf16)
            pl.BlockSpec((1, NA), lambda i: (0, 0)),   # resident action bias
        ],
        out_specs=(
            pl.BlockSpec((tm, c), lambda i: (i, 0)),
            pl.BlockSpec((tm, NA), lambda i: (i, 0)),
        ),
        compiler_params=pltpu.CompilerParams(
            dimension_semantics=("parallel",),   # shard row tiles across TCs
            vmem_limit_bytes=vmem_limit,
        ),
    )(sa_flat, ws_t, b_state.reshape(1, c), wa_t, ba_pad.reshape(1, NA))


class PACTPretrainHeadPallas:
    """JAX/Pallas equivalent of the PyTorch PACTPretrainHead module."""

    def __init__(self, head_config, input_config, key, *, tile_m=512):
        n_embd = int(head_config["n_embd"])
        self.n_embd = n_embd
        self.tile_m = tile_m
        k_state, k_action = jax.random.split(key)

        # torch.nn.Linear layout (out_features, in_features); N(0, 0.02), zero bias.
        self.w_state = 0.02 * jax.random.normal(
            k_state, (n_embd, 2 * n_embd), jnp.float32)
        self.b_state = jnp.zeros((n_embd,), jnp.float32)

        if input_config["action"]["input_type"] == "continuous":
            action_dim = 1
        else:
            action_dim = int(input_config["action"]["tokenizer_kwargs"]["action_dim"])
        self.action_dim = action_dim
        self.w_action = 0.02 * jax.random.normal(
            k_action, (action_dim, n_embd), jnp.float32)
        self.b_action = jnp.zeros((action_dim,), jnp.float32)

        # Kernel-layout parameters (prepared once):
        #  * pre-transposed to (in, out) so the kernel needs no in-kernel .T
        #  * bf16 weights -> native MXU throughput (f32 matmul is multi-pass)
        #  * action head padded only along N to 128 lanes (lane-dense stores);
        #    K stays c so the action dot does half the previous MXU work.
        self.na_pad = _round_up(action_dim, 128)
        self.ws_kernel = self.w_state.T.astype(jnp.bfloat16)           # (2c, c)
        wa = jnp.zeros((n_embd, self.na_pad), jnp.float32)
        wa = wa.at[:, :action_dim].set(self.w_action.T)
        self.wa_kernel = wa.astype(jnp.bfloat16)                       # (c, NA)
        self.ba_kernel = jnp.pad(self.b_action, (0, self.na_pad - action_dim))

    def __call__(self, out_embd):
        b, t, c = out_embd.shape
        assert c == self.n_embd and t % 2 == 0
        thalf = t // 2
        # Zero-copy view: row i of sa_flat = [token_{2i} | token_{2i+1}].
        sa_flat = out_embd.reshape(b * thalf, 2 * c)
        state_flat, action_flat = fused_pact_head(
            sa_flat, self.ws_kernel, self.b_state,
            self.wa_kernel, self.ba_kernel, tile_m=self.tile_m)
        # action_head(out_embd[:, ::2, :]) — drop the lane padding.
        action_preds = action_flat[:, : self.action_dim].reshape(
            b, thalf, self.action_dim)
        # state_head(out_embd.reshape(b, t//2, 2c)[:, :-1, :]) — the :-1 trim
        # stays on the (small) output for module-semantics fidelity; downstream
        # consumers can fuse it.
        state_preds = state_flat.reshape(b, thalf, c)[:, :-1, :]
        return state_preds, action_preds


def _reference(model, out_embd):
    """Pure-JAX f32 reference matching the PyTorch module semantics."""
    b, t, c = out_embd.shape
    hp = jax.lax.Precision.HIGHEST
    ref_action = (
        jnp.einsum("btc,ac->bta", out_embd[:, ::2, :], model.w_action, precision=hp)
        + model.b_action
    )
    sa = out_embd.reshape(b, t // 2, 2 * c)[:, :-1, :]
    ref_state = (
        jnp.einsum("btk,ck->btc", sa, model.w_state, precision=hp) + model.b_state
    )
    return ref_state, ref_action


if __name__ == "__main__":
    key = jax.random.PRNGKey(0)

    # ---- Test 1: tiny shapes, continuous action head (action_dim = 1) -----
    k1, k2, key = jax.random.split(key, 3)
    head_cfg = {"n_embd": 32}
    in_cfg = {"action": {"input_type": "continuous",
                         "tokenizer_kwargs": {"action_dim": 4}}}
    model = PACTPretrainHeadPallas(head_cfg, in_cfg, k1)
    B, T, C = 2, 8, 32
    x = jax.random.normal(k2, (B, T, C), jnp.float32)
    state_preds, action_preds = model(x)
    state_preds = jax.block_until_ready(state_preds)
    action_preds = jax.block_until_ready(action_preds)
    assert state_preds.shape == (B, T // 2 - 1, C), state_preds.shape
    assert action_preds.shape == (B, T // 2, 1), action_preds.shape
    ref_s, ref_a = _reference(model, x)
    # Tolerance covers bf16 weight/activation quantization vs the f32 reference.
    assert jnp.allclose(state_preds, ref_s, atol=2e-2, rtol=2e-2)
    assert jnp.allclose(action_preds, ref_a, atol=2e-2, rtol=2e-2)

    # ---- Test 2: lane-aligned shapes, discrete head, multi-tile grid ------
    k1, k2, key = jax.random.split(key, 3)
    head_cfg = {"n_embd": 128}
    in_cfg = {"action": {"input_type": "discrete",
                         "tokenizer_kwargs": {"action_dim": 6}}}
    model = PACTPretrainHeadPallas(head_cfg, in_cfg, k1, tile_m=512)
    B, T, C = 8, 128, 128            # M = B * T//2 = 512 -> 4 pipelined row tiles
    x = jax.random.normal(k2, (B, T, C), jnp.float32)
    state_preds, action_preds = model(x)
    state_preds = jax.block_until_ready(state_preds)
    action_preds = jax.block_until_ready(action_preds)
    assert state_preds.shape == (B, T // 2 - 1, C), state_preds.shape
    assert action_preds.shape == (B, T // 2, 6), action_preds.shape
    ref_s, ref_a = _reference(model, x)
    assert jnp.allclose(state_preds, ref_s, atol=2e-2, rtol=2e-2)
    assert jnp.allclose(action_preds, ref_a, atol=2e-2, rtol=2e-2)

    print("KERNEL_OK")
</pallas_src>

<mosaic_0001>
module attributes {stable_mosaic.version = 11 : i64} {
  func.func @_fused_head_kernel(%arg0: i32, %arg1: memref<8x64xf32, #tpu.memory_space<vmem>>, %arg2: memref<64x32xbf16, #tpu.memory_space<vmem>>, %arg3: memref<1x32xf32, #tpu.memory_space<vmem>>, %arg4: memref<32x128xbf16, #tpu.memory_space<vmem>>, %arg5: memref<1x128xf32, #tpu.memory_space<vmem>>, %arg6: memref<8x32xf32, #tpu.memory_space<vmem>>, %arg7: memref<8x128xf32, #tpu.memory_space<vmem>>) attributes {dimension_semantics = [#tpu.dimension_semantics<parallel>], iteration_bounds = array<i64: 1>, scalar_prefetch = 0 : i64, scratch_operands = 0 : i64, tpu.core_type = #tpu.core_type<tc>, window_params = [{transform_indices = @transform_0, window_bounds = array<i64: 8, 64>}, {pipeline_mode = #tpu.pipeline_mode<synchronous>, transform_indices = @transform_1, window_bounds = array<i64: 64, 32>}, {pipeline_mode = #tpu.pipeline_mode<synchronous>, transform_indices = @transform_2, window_bounds = array<i64: 1, 32>}, {pipeline_mode = #tpu.pipeline_mode<synchronous>, transform_indices = @transform_3, window_bounds = array<i64: 32, 128>}, {pipeline_mode = #tpu.pipeline_mode<synchronous>, transform_indices = @transform_4, window_bounds = array<i64: 1, 128>}, {transform_indices = @transform_5, window_bounds = array<i64: 8, 32>}, {transform_indices = @transform_6, window_bounds = array<i64: 8, 128>}]} {
    %c0 = arith.constant 0 : index
    %c0_0 = arith.constant 0 : index
    %0 = vector.load %arg1[%c0, %c0_0] : memref<8x64xf32, #tpu.memory_space<vmem>>, vector<8x64xf32>
    %1 = arith.truncf %0 : vector<8x64xf32> to vector<8x64xbf16>
    %c0_1 = arith.constant 0 : index
    %c0_2 = arith.constant 0 : index
    %2 = vector.load %arg2[%c0_1, %c0_2] : memref<64x32xbf16, #tpu.memory_space<vmem>>, vector<64x32xbf16>
    %cst = arith.constant dense<0.000000e+00> : vector<8x32xf32>
    %3 = tpu.matmul %1, %2, %cst {dimension_numbers = #tpu.dot_dimension_numbers<[1], [0], [0], [1], [0, 0, 1, 1], [], []>} : vector<8x64xbf16>, vector<64x32xbf16>, vector<8x32xf32> -> vector<8x32xf32>
    %c0_3 = arith.constant 0 : index
    %c0_4 = arith.constant 0 : index
    %4 = vector.load %arg3[%c0_3, %c0_4] : memref<1x32xf32, #tpu.memory_space<vmem>>, vector<1x32xf32>
    %5 = vector.broadcast %4 : vector<1x32xf32> to vector<8x32xf32>
    %6 = arith.addf %3, %5 : vector<8x32xf32>
    %c0_5 = arith.constant 0 : index
    %c0_6 = arith.constant 0 : index
    %7 = vector.load %arg6[%c0_5, %c0_6] : memref<8x32xf32, #tpu.memory_space<vmem>>, vector<8x32xf32>
    tpu.vector_store %arg6[%c0_5, %c0_6], %6 {strides = array<i32>} : memref<8x32xf32, #tpu.memory_space<vmem>>, vector<8x32xf32>,
    %8 = vector.extract_strided_slice %1 {offsets = [0, 0], sizes = [8, 32], strides = [1, 1]} : vector<8x64xbf16> to vector<8x32xbf16>
    %c0_7 = arith.constant 0 : index
    %c0_8 = arith.constant 0 : index
    %9 = vector.load %arg4[%c0_7, %c0_8] : memref<32x128xbf16, #tpu.memory_space<vmem>>, vector<32x128xbf16>
    %cst_9 = arith.constant dense<0.000000e+00> : vector<8x128xf32>
    %10 = tpu.matmul %8, %9, %cst_9 {dimension_numbers = #tpu.dot_dimension_numbers<[1], [0], [0], [1], [0, 0, 1, 1], [], []>} : vector<8x32xbf16>, vector<32x128xbf16>, vector<8x128xf32> -> vector<8x128xf32>
    %c0_10 = arith.constant 0 : index
    %c0_11 = arith.constant 0 : index
    %11 = vector.load %arg5[%c0_10, %c0_11] : memref<1x128xf32, #tpu.memory_space<vmem>>, vector<1x128xf32>
    %12 = vector.broadcast %11 : vector<1x128xf32> to vector<8x128xf32>
    %13 = arith.addf %10, %12 : vector<8x128xf32>
    %c0_12 = arith.constant 0 : index
    %c0_13 = arith.constant 0 : index
    %14 = vector.load %arg7[%c0_12, %c0_13] : memref<8x128xf32, #tpu.memory_space<vmem>>, vector<8x128xf32>
    tpu.vector_store %arg7[%c0_12, %c0_13], %13 {strides = array<i32>} : memref<8x128xf32, #tpu.memory_space<vmem>>, vector<8x128xf32>,
    return
  }
  func.func @transform_0(%arg0: i32) -> (i32, i32) {
    %c0_i32 = arith.constant 0 : i32
    %c0_i32_0 = arith.constant 0 : i32
    return %arg0, %c0_i32 : i32, i32
  }
  func.func @transform_1(%arg0: i32) -> (i32, i32) {
    %c0_i32 = arith.constant 0 : i32
    %c0_i32_0 = arith.constant 0 : i32
    %c0_i32_1 = arith.constant 0 : i32
    return %c0_i32, %c0_i32_0 : i32, i32
  }
  func.func @transform_2(%arg0: i32) -> (i32, i32) {
    %c0_i32 = arith.constant 0 : i32
    %c0_i32_0 = arith.constant 0 : i32
    %c0_i32_1 = arith.constant 0 : i32
    return %c0_i32, %c0_i32_0 : i32, i32
  }
  func.func @transform_3(%arg0: i32) -> (i32, i32) {
    %c0_i32 = arith.constant 0 : i32
    %c0_i32_0 = arith.constant 0 : i32
    %c0_i32_1 = arith.constant 0 : i32
    return %c0_i32, %c0_i32_0 : i32, i32
  }
  func.func @transform_4(%arg0: i32) -> (i32, i32) {
    %c0_i32 = arith.constant 0 : i32
    %c0_i32_0 = arith.constant 0 : i32
    %c0_i32_1 = arith.constant 0 : i32
    return %c0_i32, %c0_i32_0 : i32, i32
  }
  func.func @transform_5(%arg0: i32) -> (i32, i32) {
    %c0_i32 = arith.constant 0 : i32
    %c0_i32_0 = arith.constant 0 : i32
    return %arg0, %c0_i32 : i32, i32
  }
  func.func @transform_6(%arg0: i32) -> (i32, i32) {
    %c0_i32 = arith.constant 0 : i32
    %c0_i32_0 = arith.constant 0 : i32
    return %arg0, %c0_i32 : i32, i32
  }
}

</mosaic_0001>

<bundles_post_ra>
// kernel: tpu_custom_call.1
= control target key start
LH: loop header
LB: loop body
LE: loop exit
PB: predicated region body
PF: predicated region fallthrough
CT: control target
= control target key end

     0   :  { %12 = vsyncpa [#allocation3], 0  ;;  %s310_s0 = inlined_call_operand.vmem [shape: f32[8,64], index: 0, kind: input, shape index: {}]   ;;  %s311_s1 = inlined_call_operand.vmem [shape: bf16[64,32], index: 1, kind: input, shape index: {}]   ;;  %s312_s2 = inlined_call_operand.vmem [shape: f32[1,32], index: 2, kind: input, shape index: {}]   ;;  %s313_s3 = inlined_call_operand.vmem [shape: bf16[32,128], index: 3, kind: input, shape index: {}]   ;;  %s314_s4 = inlined_call_operand.vmem [shape: f32[1,128], index: 4, kind: input, shape index: {}]   ;;  %s315_s5 = inlined_call_operand.hbm [shape: f32[8,32], index: 5, kind: output, shape index: {0}]   ;;  %s316_s6 = inlined_call_operand.hbm [shape: f32[8,128], index: 6, kind: output, shape index: {1}]  }
   0x1   :  { %v179_v0 = vld [vmem:[%s311_s1 + $0x18] sm:$0xff]  ;;  %v181_v1 = vld [vmem:[%s313_s3 + $0x8] sm:$0xff]  ;;  %v178_v2 = vld [vmem:[%s311_s1 + $0x10] sm:$0xff] }
   0x2   :  { %71 = vmatpush.bf16.msra.mxu0 %v179_v0  ;;  %110 = vmatpush.bf16.msra.mxu1 %v181_v1  ;;  %v180_v3 = vld [vmem:[%s313_s3] sm:$0xff] }
   0x3   :  { %v25_v4 = vld [vmem:[%s310_s0] sm:$0xff] }
   0x4   :  { %13 = vsyncpa [#allocation5], 0  ;;  %v26_v5 = vpack.c.bf16 %v25_v4, %v25_v4  ;;  %vm80_vm0 = vcmask 261120   ;;  %v177_v6 = vld [vmem:[%s311_s1 + $0x8] sm:$0xff]  ;;  %v176_v7 = vld [vmem:[%s311_s1] sm:$0xff]  ;;  %vm63_vm1 = vcmask 523264  }
   0x5   :  { %v184_v8 = vld [vmem:[%s314_s4] ss:$0 sm:$0xff]  ;;  %s238_s11 = smov [#allocation4]   ;;  %s136_s15 = sshll.u32 %s316_s6, 4  ;;  %s137_s15 = int_to_ptr.hbm [resolvable:$true] %s136_s15 }
   0x6   :  { %72 = vmatpush.bf16.msra.mxu0 %v178_v2  ;;  %111 = vmatpush.bf16.msra.mxu1 %v180_v3  ;;  %s134_s12 = sshll.u32 %s238_s11, 4  ;;  %v185_v11 = vld [vmem:[%s312_s2] ss:$0 sm:$0xff]  ;;  %s239_s17 = smov [#allocation2]   ;;  %s135_s12 = int_to_ptr.vmem [resolvable:$true] %s134_s12 }
   0x7   :  { %s123_s18 = sshll.u32 %s239_s17, 4  ;;  %s125_s20 = sshll.u32 %s315_s5, 4  ;;  %s124_s18 = int_to_ptr.vmem [resolvable:$true] %s123_s18  ;;  %s126_s20 = int_to_ptr.hbm [resolvable:$true] %s125_s20 }
   0x9   :  { %175 = vmatmul.msk.bf16.vlgmr.msra.gmra.mxu1 %vm80_vm0, %v26_v5 }
   0xa   :  { %73 = vmatpush.bf16.msra.mxu0 %v177_v6 }
   0xe   :  { %74 = vmatpush.bf16.msra.mxu0 %v176_v7 }
  0x11   :  { %166 = vmatmul.msk.bf16.vlgmr.msra.gmra.mxu0 %vm63_vm1, %v26_v5 }
  0x86   :  { %v113_v9 = vpop.f32.mrf.mxu1 }
  0x87   :  { %v114_v10 = vadd.f32 %v184_v8, %v113_v9 }
  0x89   :  { %117 = vst [vmem:[#allocation4] sm:$0xff] %v114_v10 }
  0x8a   :  { %139 = dma.vmem_to_hbm [thread:$0]  %s135_s12, 128, %s137_s15, [#allocation5]  }
  0x8e   :  { %v76_v12 = vpop.f32.mrf.mxu0  ;;  %v115_v13 = vpop.f32.mrf.mxu1 }
  0x8f   :  { %v77_v14 = vadd.f32 %v185_v11, %v76_v12 }
  0x91   :  { %81 = vst.msk [vmem:[#allocation2] sm:$0xff] %vm80_vm0, %v77_v14 }
  0x92   :  { %128 = dma.vmem_to_hbm [thread:$0]  %s124_s18, 128, %s126_s20, [#allocation3]  }
  0x96   :  { %v78_v15 = vpop.f32.mrf.mxu0 }
  0x97   :  { %234 = dma.done.wait [#allocation3], 128  }
  0x98   :  { %235 = vsyncadd [#allocation3], 4294967168 }
  0x99   :  { %236 = dma.done.wait [#allocation5], 128  }
  0x9a   :  { %237 = vsyncadd [#allocation5], 4294967168 }
  0x9b   :  { %148 = vsyncpa [#allocation3], 1 }
  0x9c   :  { %149 = vsyncpa [#allocation5], 1 }

</bundles_post_ra>
